<compile_context>
chip_gen: v7x
topology: tpu7x:2x2x1
jax: 0.10.0
libtpu: 0.0.40
codegen_flags: <defaults>
</compile_context>

<pallas_src>
import jax
import jax.numpy as jnp
from jax import lax
from jax.experimental import pallas as pl
from jax.experimental.pallas import tpu as pltpu

EMBEDDING_DIM = 10

corpus = [
    'the quick brown fox jumps over the lazy dog',
    'I love learning new things about machine learning',
]
words = [w for s in corpus for w in s.split()]
vocab = sorted(set(words))          # deterministic ordering
VOCAB_SIZE = len(vocab)             # = 15

LANE = 128                          # f32 lane width
SUBLANE = 8                         # f32 sublane width
TB = 128                            # context windows per grid step (MXU M dim)


def _round_up(x, m):
    return (x + m - 1) // m * m


def w2v_kernel(idx_ref, emb_ref, w_ref, b_ref, out_ref):
    """Per grid step: one-hot count matmul (gather+mean) then projection.

    idx_ref : int32 [TB, C]        (context word ids, VMEM)
    emb_ref : f32   [Vp_emb, Dp]   (embedding table, V zero-padded to 128)
    w_ref   : f32   [Dp, Vp]       (pre-transposed, pre-padded linear weight)
    b_ref   : f32   [1, Vp]
    out_ref : f32   [TB, Vp]
    """
    vp_emb, dp = emb_ref.shape
    tb, c = idx_ref.shape
    inv_c = 1.0 / c                                     # static context length

    idx = idx_ref[...]                                  # [TB, C] int32
    iota_v = lax.broadcasted_iota(jnp.int32, (tb, vp_emb), 1)

    # counts[r, v] = #{i : idx[r, i] == v}  -- built with C (static, tiny)
    # vectorized compares; out-of-range ids hit zero-padded embedding rows.
    counts = jnp.zeros((tb, vp_emb), jnp.float32)
    for i in range(c):                                  # static unroll, C small
        counts = counts + (idx[:, i:i + 1] == iota_v).astype(jnp.float32)

    # mean embeddings: [TB, Vp_emb] @ [Vp_emb, Dp] on the MXU, kept in regs.
    mean = jnp.dot(counts * inv_c, emb_ref[...],
                   preferred_element_type=jnp.float32)  # [TB, Dp]

    # projection: [TB, Dp] @ [Dp, Vp] + bias -> lane-dense unmasked store.
    out_ref[...] = jnp.dot(mean, w_ref[...],
                           preferred_element_type=jnp.float32) + b_ref[...]


def prepare_params(emb_w, lin_w, lin_b):
    """One-time param prep (hoisted out of the forward path): transpose the
    linear weight and zero-pad D -> Dp (sublane multiple), V -> Vp (lane
    multiple), and the embedding V -> 128 (K dim of the counts matmul)."""
    V, D = emb_w.shape
    Dp = _round_up(D, SUBLANE)
    Vp = _round_up(V, LANE)
    Vp_emb = _round_up(V, LANE)
    emb_p = jnp.zeros((Vp_emb, Dp), jnp.float32).at[:V, :D].set(emb_w)
    w_p = jnp.zeros((Dp, Vp), jnp.float32).at[:D, :V].set(lin_w.T)
    b_p = jnp.zeros((1, Vp), jnp.float32).at[0, :V].set(lin_b)
    return emb_p, w_p, b_p


def word2vec_forward_batched(inputs, emb_p, w_p, b_p, vocab_size):
    """inputs: int32 [B, C] -> logits f32 [B, vocab_size]."""
    B, C = inputs.shape
    Vp_emb, Dp = emb_p.shape
    _, Vp = w_p.shape

    # Pad the batch up to a multiple of TB (padding rows use index 0; their
    # outputs are discarded below).
    Bp = _round_up(B, TB)
    idx = jnp.zeros((Bp, C), jnp.int32).at[:B].set(inputs.astype(jnp.int32))

    flops = 2 * Bp * Vp_emb * Dp + 2 * Bp * Dp * Vp
    bytes_accessed = 4 * (Bp * C + Vp_emb * Dp + Dp * Vp + Vp + Bp * Vp)

    out = pl.pallas_call(
        w2v_kernel,
        out_shape=jax.ShapeDtypeStruct((Bp, Vp), jnp.float32),
        grid_spec=pltpu.PrefetchScalarGridSpec(
            num_scalar_prefetch=0,
            grid=(Bp // TB,),
            in_specs=[
                pl.BlockSpec((TB, C), lambda b: (b, 0)),
                pl.BlockSpec((Vp_emb, Dp), lambda b: (0, 0)),
                pl.BlockSpec((Dp, Vp), lambda b: (0, 0)),
                pl.BlockSpec((1, Vp), lambda b: (0, 0)),
            ],
            out_specs=pl.BlockSpec((TB, Vp), lambda b: (b, 0)),
        ),
        compiler_params=pltpu.CompilerParams(
            dimension_semantics=("parallel",)),   # megacore shard on v7x
        cost_estimate=pl.CostEstimate(flops=flops, transcendentals=0,
                                      bytes_accessed=bytes_accessed),
    )(idx, emb_p, w_p, b_p)
    return out[:B, :vocab_size]


def word2vec_forward(inputs, emb_p, w_p, b_p, vocab_size):
    """Module semantics: inputs int32 [C] -> logits f32 [vocab_size]."""
    return word2vec_forward_batched(inputs[None, :], emb_p, w_p, b_p,
                                    vocab_size)[0]


def reference_forward(inputs, emb_w, lin_w, lin_b):
    embeds = emb_w[inputs].mean(axis=0)
    return embeds @ lin_w.T + lin_b


def reference_forward_batched(inputs, emb_w, lin_w, lin_b):
    embeds = emb_w[inputs].mean(axis=1)                  # [B, D]
    return embeds @ lin_w.T + lin_b[None, :]


# TODO(synk): at real vocab sizes, tile [Dp, Vp] along V (TVn a large multiple
# of 128), grid=(Bp//TB, V//TVn) both "parallel", stream w_p in bf16 (fp8 on
# v7x), gather only the needed embedding rows with a manual double-buffered
# make_async_copy from memory_space=pl.ANY, and set vmem_limit_bytes against
# the 64 MiB v7x budget.

if __name__ == "__main__":
    key = jax.random.PRNGKey(0)
    k_emb, k_w, k_b, k_idx, k_idx2 = jax.random.split(key, 5)

    # nn.Embedding: N(0,1); nn.Linear: U(-1/sqrt(in), 1/sqrt(in))
    emb_w = jax.random.normal(k_emb, (VOCAB_SIZE, EMBEDDING_DIM), jnp.float32)
    bound = 1.0 / (EMBEDDING_DIM ** 0.5)
    lin_w = jax.random.uniform(k_w, (VOCAB_SIZE, EMBEDDING_DIM), jnp.float32,
                               -bound, bound)
    lin_b = jax.random.uniform(k_b, (VOCAB_SIZE,), jnp.float32, -bound, bound)

    # One-time parameter prep (transpose + pad), hoisted out of the forward.
    emb_p, w_p, b_p = prepare_params(emb_w, lin_w, lin_b)

    # Batch of B CBOW-style context windows, C words each (single grid step).
    B, C = 16, 4
    inputs_b = jax.random.randint(k_idx, (B, C), 0, VOCAB_SIZE, jnp.int32)

    out_b = word2vec_forward_batched(inputs_b, emb_p, w_p, b_p, VOCAB_SIZE)
    out_b = jax.block_until_ready(out_b)
    ref_b = reference_forward_batched(inputs_b, emb_w, lin_w, lin_b)
    assert out_b.shape == (B, VOCAB_SIZE)
    assert jnp.allclose(out_b, ref_b, atol=1e-5, rtol=1e-5)

    # Larger batch exercising a multi-step "parallel" grid (Bp=256 -> 2 steps).
    B2 = 200
    inputs_b2 = jax.random.randint(k_idx2, (B2, C), 0, VOCAB_SIZE, jnp.int32)
    out_b2 = word2vec_forward_batched(inputs_b2, emb_p, w_p, b_p, VOCAB_SIZE)
    out_b2 = jax.block_until_ready(out_b2)
    ref_b2 = reference_forward_batched(inputs_b2, emb_w, lin_w, lin_b)
    assert out_b2.shape == (B2, VOCAB_SIZE)
    assert jnp.allclose(out_b2, ref_b2, atol=1e-5, rtol=1e-5)

    # Single-context path (exact nn.Module forward semantics).
    out_1 = word2vec_forward(inputs_b[0], emb_p, w_p, b_p, VOCAB_SIZE)
    out_1 = jax.block_until_ready(out_1)
    ref_1 = reference_forward(inputs_b[0], emb_w, lin_w, lin_b)
    assert out_1.shape == (VOCAB_SIZE,)
    assert jnp.allclose(out_1, ref_1, atol=1e-5, rtol=1e-5)

    print("KERNEL_OK")
</pallas_src>

<mosaic_0001>
module attributes {stable_mosaic.version = 11 : i64} {
  func.func @w2v_kernel(%arg0: i32, %arg1: memref<128x4xi32, #tpu.memory_space<vmem>>, %arg2: memref<128x16xf32, #tpu.memory_space<vmem>>, %arg3: memref<16x128xf32, #tpu.memory_space<vmem>>, %arg4: memref<1x128xf32, #tpu.memory_space<vmem>>, %arg5: memref<128x128xf32, #tpu.memory_space<vmem>>) attributes {dimension_semantics = [#tpu.dimension_semantics<parallel>], iteration_bounds = array<i64: 1>, scalar_prefetch = 0 : i64, scratch_operands = 0 : i64, tpu.core_type = #tpu.core_type<tc>, window_params = [{transform_indices = @transform_0, window_bounds = array<i64: 128, 4>}, {pipeline_mode = #tpu.pipeline_mode<synchronous>, transform_indices = @transform_1, window_bounds = array<i64: 128, 16>}, {pipeline_mode = #tpu.pipeline_mode<synchronous>, transform_indices = @transform_2, window_bounds = array<i64: 16, 128>}, {pipeline_mode = #tpu.pipeline_mode<synchronous>, transform_indices = @transform_3, window_bounds = array<i64: 1, 128>}, {transform_indices = @transform_4, window_bounds = array<i64: 128, 128>}]} {
    %c0 = arith.constant 0 : index
    %c0_0 = arith.constant 0 : index
    %0 = vector.load %arg1[%c0, %c0_0] : memref<128x4xi32, #tpu.memory_space<vmem>>, vector<128x4xi32>
    %1 = tpu.iota {dimensions = array<i32: 1>} : vector<128x128xi32>
    %cst = arith.constant 0.000000e+00 : f32
    %2 = vector.broadcast %cst : f32 to vector<128x128xf32>
    %3 = vector.extract_strided_slice %0 {offsets = [0, 0], sizes = [128, 1], strides = [1, 1]} : vector<128x4xi32> to vector<128x1xi32>
    %4 = vector.broadcast %3 : vector<128x1xi32> to vector<128x128xi32>
    %5 = arith.cmpi eq, %4, %1 : vector<128x128xi32>
    %6 = arith.extui %5 : vector<128x128xi1> to vector<128x128xi32>
    %7 = arith.sitofp %6 : vector<128x128xi32> to vector<128x128xf32>
    %8 = arith.addf %2, %7 : vector<128x128xf32>
    %9 = vector.extract_strided_slice %0 {offsets = [0, 1], sizes = [128, 1], strides = [1, 1]} : vector<128x4xi32> to vector<128x1xi32>
    %10 = vector.broadcast %9 : vector<128x1xi32> to vector<128x128xi32>
    %11 = arith.cmpi eq, %10, %1 : vector<128x128xi32>
    %12 = arith.extui %11 : vector<128x128xi1> to vector<128x128xi32>
    %13 = arith.sitofp %12 : vector<128x128xi32> to vector<128x128xf32>
    %14 = arith.addf %8, %13 : vector<128x128xf32>
    %15 = vector.extract_strided_slice %0 {offsets = [0, 2], sizes = [128, 1], strides = [1, 1]} : vector<128x4xi32> to vector<128x1xi32>
    %16 = vector.broadcast %15 : vector<128x1xi32> to vector<128x128xi32>
    %17 = arith.cmpi eq, %16, %1 : vector<128x128xi32>
    %18 = arith.extui %17 : vector<128x128xi1> to vector<128x128xi32>
    %19 = arith.sitofp %18 : vector<128x128xi32> to vector<128x128xf32>
    %20 = arith.addf %14, %19 : vector<128x128xf32>
    %21 = vector.extract_strided_slice %0 {offsets = [0, 3], sizes = [128, 1], strides = [1, 1]} : vector<128x4xi32> to vector<128x1xi32>
    %22 = vector.broadcast %21 : vector<128x1xi32> to vector<128x128xi32>
    %23 = arith.cmpi eq, %22, %1 : vector<128x128xi32>
    %24 = arith.extui %23 : vector<128x128xi1> to vector<128x128xi32>
    %25 = arith.sitofp %24 : vector<128x128xi32> to vector<128x128xf32>
    %26 = arith.addf %20, %25 : vector<128x128xf32>
    %cst_1 = arith.constant 2.500000e-01 : f32
    %27 = vector.broadcast %cst_1 : f32 to vector<128x128xf32>
    %28 = arith.mulf %26, %27 : vector<128x128xf32>
    %c0_2 = arith.constant 0 : index
    %c0_3 = arith.constant 0 : index
    %29 = vector.load %arg2[%c0_2, %c0_3] : memref<128x16xf32, #tpu.memory_space<vmem>>, vector<128x16xf32>
    %cst_4 = arith.constant dense<0.000000e+00> : vector<128x16xf32>
    %30 = tpu.matmul %28, %29, %cst_4 {dimension_numbers = #tpu.dot_dimension_numbers<[1], [0], [0], [1], [0, 0, 1, 1], [], []>} : vector<128x128xf32>, vector<128x16xf32>, vector<128x16xf32> -> vector<128x16xf32>
    %c0_5 = arith.constant 0 : index
    %c0_6 = arith.constant 0 : index
    %31 = vector.load %arg3[%c0_5, %c0_6] : memref<16x128xf32, #tpu.memory_space<vmem>>, vector<16x128xf32>
    %cst_7 = arith.constant dense<0.000000e+00> : vector<128x128xf32>
    %32 = tpu.matmul %30, %31, %cst_7 {dimension_numbers = #tpu.dot_dimension_numbers<[1], [0], [0], [1], [0, 0, 1, 1], [], []>} : vector<128x16xf32>, vector<16x128xf32>, vector<128x128xf32> -> vector<128x128xf32>
    %c0_8 = arith.constant 0 : index
    %c0_9 = arith.constant 0 : index
    %33 = vector.load %arg4[%c0_8, %c0_9] : memref<1x128xf32, #tpu.memory_space<vmem>>, vector<1x128xf32>
    %34 = vector.broadcast %33 : vector<1x128xf32> to vector<128x128xf32>
    %35 = arith.addf %32, %34 : vector<128x128xf32>
    %c0_10 = arith.constant 0 : index
    %c0_11 = arith.constant 0 : index
    %36 = vector.load %arg5[%c0_10, %c0_11] : memref<128x128xf32, #tpu.memory_space<vmem>>, vector<128x128xf32>
    tpu.vector_store %arg5[%c0_10, %c0_11], %35 {strides = array<i32>} : memref<128x128xf32, #tpu.memory_space<vmem>>, vector<128x128xf32>,
    return
  }
  func.func @transform_0(%arg0: i32) -> (i32, i32) {
    %c0_i32 = arith.constant 0 : i32
    %c0_i32_0 = arith.constant 0 : i32
    return %arg0, %c0_i32 : i32, i32
  }
  func.func @transform_1(%arg0: i32) -> (i32, i32) {
    %c0_i32 = arith.constant 0 : i32
    %c0_i32_0 = arith.constant 0 : i32
    %c0_i32_1 = arith.constant 0 : i32
    return %c0_i32, %c0_i32_0 : i32, i32
  }
  func.func @transform_2(%arg0: i32) -> (i32, i32) {
    %c0_i32 = arith.constant 0 : i32
    %c0_i32_0 = arith.constant 0 : i32
    %c0_i32_1 = arith.constant 0 : i32
    return %c0_i32, %c0_i32_0 : i32, i32
  }
  func.func @transform_3(%arg0: i32) -> (i32, i32) {
    %c0_i32 = arith.constant 0 : i32
    %c0_i32_0 = arith.constant 0 : i32
    %c0_i32_1 = arith.constant 0 : i32
    return %c0_i32, %c0_i32_0 : i32, i32
  }
  func.func @transform_4(%arg0: i32) -> (i32, i32) {
    %c0_i32 = arith.constant 0 : i32
    %c0_i32_0 = arith.constant 0 : i32
    return %arg0, %c0_i32 : i32, i32
  }
}

</mosaic_0001>

<bundles_post_ra>
// kernel: tpu_custom_call.1
= control target key start
LH: loop header
LB: loop body
LE: loop exit
PB: predicated region body
PF: predicated region fallthrough
CT: control target
= control target key end

     0   :  { %v1223_v2 = vmov 0   ;;  %s1689_s0 = inlined_call_operand.vmem [shape: s32[128,4], index: 0, kind: input, shape index: {}]   ;;  %s1690_s1 = inlined_call_operand.vmem [shape: f32[128,16], index: 1, kind: input, shape index: {}]   ;;  %s1691_s2 = inlined_call_operand.vmem [shape: f32[16,128], index: 2, kind: input, shape index: {}]   ;;  %s1692_s3 = inlined_call_operand.vmem [shape: f32[1,128], index: 3, kind: input, shape index: {}]   ;;  %s1693_s4 = inlined_call_operand.hbm [shape: f32[128,128], index: 4, kind: output, shape index: {}]  }
   0x1   :  { %v1259_v0 = vld [vmem:[%s1689_s0 + $0x8] sm:$0xff]  ;;  %v18_v1 = vld [vmem:[%s1689_s0] sm:$0xff]  ;;  %1157 = vset.pattern.permute.xlu1 %v1223_v2  ;;  %1155 = vset.pattern.permute.xlu0 %v1223_v2 }
   0x2   :  { %40 = vperm.xlu1 %1157, %v1259_v0   ;;  %37 = vperm.xlu0 %1155, %v18_v1  }
   0x3   :  { %9 = vsyncpa [#allocation3], 0  ;;  %v1224_v3 = vmov 1   ;;  %v1225_v4 = vmov 2   ;;  %v1226_v5 = vmov 3   ;;  %v20_v6 = vld [vmem:[%s1689_s0 + $0x10] sm:$0xff]  ;;  %v34_v43 = vlaneseq }
   0x4   :  { %v1281_v7 = vld [vmem:[%s1689_s0 + $0x18] sm:$0xff]  ;;  %v22_v8 = vld [vmem:[%s1689_s0 + $0x20] sm:$0xff]  ;;  %v1292_v9 = vld [vmem:[%s1689_s0 + $0x28] sm:$0xff]  ;;  %v1227_v49 = vmov 0.0  }
   0x5   :  { %v1300_v10 = vld [vmem:[%s1689_s0 + $0x30] sm:$0xff]  ;;  %v1307_v11 = vld [vmem:[%s1689_s0 + $0x38] sm:$0xff]  ;;  %v1314_v12 = vld [vmem:[%s1689_s0 + $0x40] sm:$0xff]  ;;  %v1444_v46 = vand.u32 127, %v34_v43 }
   0x6   :  { %1158 = vset.pattern.permute.xlu1 %v1224_v3  ;;  %1156 = vset.pattern.permute.xlu0 %v1224_v3  ;;  %v500_v13 = vld [vmem:[%s1690_s1] sm:$0xff]  ;;  %v501_v14 = vld [vmem:[%s1690_s1 + $0x8] sm:$0xff]  ;;  %v502_v17 = vld [vmem:[%s1690_s1 + $0x10] sm:$0xff] }
   0x7   :  { %152 = vperm.xlu1 %1158, %v1259_v0   ;;  %149 = vperm.xlu0 %1156, %v18_v1   ;;  %v1111_v15 = vpack.c.bf16 %v501_v14, %v500_v13  ;;  %v1326_v16 = vld [vmem:[%s1689_s0 + $0x48] sm:$0xff]  ;;  %v503_v18 = vld [vmem:[%s1690_s1 + $0x18] sm:$0xff]  ;;  %v1339_v20 = vld [vmem:[%s1689_s0 + $0x50] sm:$0xff] }
   0x8   :  { %v1115_v19 = vpack.c.bf16 %v503_v18, %v502_v17  ;;  %v504_v21 = vld [vmem:[%s1690_s1 + $0x20] sm:$0xff]  ;;  %v505_v22 = vld [vmem:[%s1690_s1 + $0x28] sm:$0xff]  ;;  %v1353_v24 = vld [vmem:[%s1689_s0 + $0x58] sm:$0xff] }
   0x9   :  { %1112 = vmatprep.subr.bf16.mxu0 %v1111_v15  ;;  %v1119_v23 = vpack.c.bf16 %v505_v22, %v504_v21  ;;  %v506_v25 = vld [vmem:[%s1690_s1 + $0x30] sm:$0xff]  ;;  %v507_v26 = vld [vmem:[%s1690_s1 + $0x38] sm:$0xff]  ;;  %v1367_v28 = vld [vmem:[%s1689_s0 + $0x60] sm:$0xff] }
   0xa   :  { %1114 = vmatpush3.bf16.msra.mxu0 %v1111_v15  ;;  %v1123_v27 = vpack.c.bf16 %v507_v26, %v506_v25  ;;  %v508_v29 = vld [vmem:[%s1690_s1 + $0x40] sm:$0xff]  ;;  %v509_v30 = vld [vmem:[%s1690_s1 + $0x48] sm:$0xff]  ;;  %v510_v33 = vld [vmem:[%s1690_s1 + $0x50] sm:$0xff] }
   0xb   :  { %1159 = vset.pattern.permute.xlu1 %v1225_v4  ;;  %1162 = vset.pattern.permute.xlu0 %v1226_v5  ;;  %v1127_v31 = vpack.c.bf16 %v509_v30, %v508_v29  ;;  %v1380_v32 = vld [vmem:[%s1689_s0 + $0x68] sm:$0xff]  ;;  %v511_v34 = vld [vmem:[%s1690_s1 + $0x58] sm:$0xff]  ;;  %v512_v36 = vld [vmem:[%s1690_s1 + $0x60] sm:$0xff] }
   0xc   :  { %261 = vperm.xlu1 %1159, %v18_v1   ;;  %373 = vperm.xlu0 %1162, %v18_v1   ;;  %v1131_v35 = vpack.c.bf16 %v511_v34, %v510_v33  ;;  %v513_v37 = vld [vmem:[%s1690_s1 + $0x68] sm:$0xff]  ;;  %v514_v39 = vld [vmem:[%s1690_s1 + $0x70] sm:$0xff]  ;;  %v515_v40 = vld [vmem:[%s1690_s1 + $0x78] sm:$0xff] }
   0xd   :  { %1116 = vmatprep.subr.bf16.mxu0 %v1115_v19  ;;  %v1135_v38 = vpack.c.bf16 %v513_v37, %v512_v36  ;;  %v1139_v41 = vpack.c.bf16 %v515_v40, %v514_v39  ;;  %v1424_v42 = vld [vmem:[%s1689_s0 + $0x78] sm:$0xff] }
   0xe   :  { %1118 = vmatpush3.bf16.msra.mxu0 %v1115_v19 }
   0xf   :  { %1120 = vmatprep.subr.bf16.mxu0 %v1119_v23 }
  0x10   :  { %1160 = vset.pattern.permute.xlu1 %v1223_v2  ;;  %376 = vperm.xlu0 %1162, %v1259_v0  }
  0x11   :  { %43 = vperm.xlu1 %1160, %v20_v6  }
  0x12   :  { %1122 = vmatpush3.bf16.msra.mxu0 %v1119_v23 }
  0x13   :  { %1124 = vmatprep.subr.bf16.mxu0 %v1123_v27 }
  0x14   :  { %379 = vperm.xlu0 %1162, %v20_v6  }
  0x15   :  { %1161 = vset.pattern.permute.xlu1 %v1224_v3 }
  0x16   :  { %155 = vperm.xlu1 %1161, %v20_v6   ;;  %1126 = vmatpush3.bf16.msra.mxu0 %v1123_v27 }
  0x17   :  { %1128 = vmatprep.subr.bf16.mxu0 %v1127_v31 }
  0x18   :  { %382 = vperm.xlu0 %1162, %v1281_v7  }
  0x1a   :  { %1163 = vset.pattern.permute.xlu1 %v1223_v2  ;;  %1130 = vmatpush3.bf16.msra.mxu0 %v1127_v31 }
  0x1b   :  { %46 = vperm.xlu1 %1163, %v1281_v7   ;;  %1132 = vmatprep.subr.bf16.mxu0 %v1131_v35 }
  0x1c   :  { %385 = vperm.xlu0 %1162, %v22_v8  }
  0x1e   :  { %1134 = vmatpush3.bf16.msra.mxu0 %v1131_v35 }
  0x1f   :  { %1164 = vset.pattern.permute.xlu1 %v1224_v3  ;;  %1136 = vmatprep.subr.bf16.mxu0 %v1135_v38 }
  0x20   :  { %158 = vperm.xlu1 %1164, %v1281_v7   ;;  %388 = vperm.xlu0 %1162, %v1292_v9  }
  0x22   :  { %1138 = vmatpush3.bf16.msra.mxu0 %v1135_v38 }
  0x23   :  { %1140 = vmatprep.subr.bf16.mxu0 %v1139_v41 }
  0x24   :  { %1165 = vset.pattern.permute.xlu1 %v1225_v4  ;;  %391 = vperm.xlu0 %1162, %v1300_v10  }
  0x25   :  { %267 = vperm.xlu1 %1165, %v20_v6  }
  0x26   :  { %1142 = vmatpush3.bf16.msra.mxu0 %v1139_v41 }
  0x28   :  { %394 = vperm.xlu0 %1162, %v1307_v11  }
  0x29   :  { %1166 = vset.pattern.permute.xlu1 %v1223_v2 }
  0x2a   :  { %49 = vperm.xlu1 %1166, %v22_v8  }
  0x2c   :  { %397 = vperm.xlu0 %1162, %v1314_v12  }
  0x2e   :  { %1167 = vset.pattern.permute.xlu1 %v1224_v3 }
  0x2f   :  { %161 = vperm.xlu1 %1167, %v22_v8  }
  0x30   :  { %400 = vperm.xlu0 %1162, %v1326_v16  }
  0x33   :  { %1168 = vset.pattern.permute.xlu1 %v1223_v2 }
  0x34   :  { %52 = vperm.xlu1 %1168, %v1292_v9   ;;  %403 = vperm.xlu0 %1162, %v1339_v20  }
  0x38   :  { %1169 = vset.pattern.permute.xlu1 %v1224_v3  ;;  %406 = vperm.xlu0 %1162, %v1353_v24  }
  0x39   :  { %164 = vperm.xlu1 %1169, %v1292_v9  }
  0x3c   :  { %409 = vperm.xlu0 %1162, %v1367_v28  }
  0x3d   :  { %1170 = vset.pattern.permute.xlu1 %v1225_v4 }
  0x3e   :  { %273 = vperm.xlu1 %1170, %v22_v8  }
  0x40   :  { %412 = vperm.xlu0 %1162, %v1380_v32  }
  0x42   :  { %1171 = vset.pattern.permute.xlu1 %v1223_v2 }
  0x43   :  { %55 = vperm.xlu1 %1171, %v1300_v10  }
  0x44   :  { %1195 = vset.pattern.permute.xlu0 %v1225_v4 }
  0x45   :  { %264 = vperm.xlu0 %1195, %v1259_v0  }
  0x47   :  { %1172 = vset.pattern.permute.xlu1 %v1224_v3 }
  0x48   :  { %167 = vperm.xlu1 %1172, %v1300_v10  }
  0x49   :  { %270 = vperm.xlu0 %1195, %v1281_v7  }
  0x4c   :  { %1173 = vset.pattern.permute.xlu1 %v1223_v2 }
  0x4d   :  { %58 = vperm.xlu1 %1173, %v1307_v11   ;;  %276 = vperm.xlu0 %1195, %v1292_v9  }
  0x51   :  { %1174 = vset.pattern.permute.xlu1 %v1224_v3  ;;  %282 = vperm.xlu0 %1195, %v1307_v11  }
  0x52   :  { %170 = vperm.xlu1 %1174, %v1307_v11   ;;  %v32_v11 = vld [vmem:[%s1689_s0 + $0x70] sm:$0xff] }
  0x55   :  { %288 = vperm.xlu0 %1195, %v1326_v16  }
  0x56   :  { %1175 = vset.pattern.permute.xlu1 %v1225_v4 }
  0x57   :  { %279 = vperm.xlu1 %1175, %v1300_v10  }
  0x59   :  { %294 = vperm.xlu0 %1195, %v1353_v24  }
  0x5b   :  { %1176 = vset.pattern.permute.xlu1 %v1223_v2 }
  0x5c   :  { %61 = vperm.xlu1 %1176, %v1314_v12  }
  0x5d   :  { %300 = vperm.xlu0 %1195, %v1380_v32  }
  0x60   :  { %1177 = vset.pattern.permute.xlu1 %v1224_v3 }
  0x61   :  { %173 = vperm.xlu1 %1177, %v1314_v12   ;;  %306 = vperm.xlu0 %1195, %v1424_v42  }
  0x65   :  { %1178 = vset.pattern.permute.xlu1 %v1223_v2  ;;  %1198 = vset.pattern.permute.xlu0 %v1226_v5 }
  0x66   :  { %64 = vperm.xlu1 %1178, %v1326_v16  }
  0x6a   :  { %1179 = vset.pattern.permute.xlu1 %v1224_v3 }
  0x6b   :  { %176 = vperm.xlu1 %1179, %v1326_v16  }
  0x6f   :  { %1180 = vset.pattern.permute.xlu1 %v1225_v4 }
  0x70   :  { %285 = vperm.xlu1 %1180, %v1314_v12  }
  0x74   :  { %1181 = vset.pattern.permute.xlu1 %v1223_v2 }
  0x75   :  { %67 = vperm.xlu1 %1181, %v1339_v20  }
  0x79   :  { %1182 = vset.pattern.permute.xlu1 %v1224_v3 }
  0x7a   :  { %179 = vperm.xlu1 %1182, %v1339_v20  }
  0x7e   :  { %1183 = vset.pattern.permute.xlu1 %v1223_v2 }
  0x7f   :  { %70 = vperm.xlu1 %1183, %v1353_v24  }
  0x81   :  { %v1442_v44 = vpop.permute.xlu1 %40  ;;  %v38_v45 = vpop.permute.xlu0 %37 }
  0x82   :  { %vm84_vm0 = vcmp.eq.s32.totalorder %v38_v45, %v1444_v46  ;;  %vm85_vm8 = vcmp.eq.s32.totalorder %v1442_v44, %v1444_v46 }
  0x83   :  { %1184 = vset.pattern.permute.xlu1 %v1224_v3  ;;  %v896_v50 = vsel %vm84_vm0, 1.0, %v1227_v49  ;;  %v897_v26 = vsel %vm85_vm8, 1.0, %v1227_v49 }
  0x84   :  { %182 = vperm.xlu1 %1184, %v1353_v24  }
  0x86   :  { %v1449_v47 = vpop.permute.xlu1 %152  ;;  %v150_v48 = vpop.permute.xlu0 %149 }
  0x87   :  { %vm196_vm1 = vcmp.eq.s32.totalorder %v150_v48, %v1444_v46  ;;  %vm197_vm5 = vcmp.eq.s32.totalorder %v1449_v47, %v1444_v46 }
  0x88   :  { %1185 = vset.pattern.permute.xlu1 %v1225_v4  ;;  %v912_v51 = vsel %vm196_vm1, 1.0, %v1227_v49 }
  0x89   :  { %291 = vperm.xlu1 %1185, %v1339_v20   ;;  %v244_v52 = vadd.f32 %v912_v51, %v896_v50 }
  0x8b   :  { %v262_v53 = vpop.permute.xlu1 %261  ;;  %v374_v54 = vpop.permute.xlu0 %373 }
  0x8c   :  { %vm308_vm2 = vcmp.eq.s32.totalorder %v262_v53, %v1444_v46  ;;  %vm420_vm3 = vcmp.eq.s32.totalorder %v374_v54, %v1444_v46  ;;  %v662_v53 = vld [vmem:[%s1691_s2 + $0x8] sm:$0xff] }
  0x8d   :  { %v928_v55 = vsel %vm308_vm2, 1.0, %v1227_v49  ;;  %1186 = vset.pattern.permute.xlu1 %v1223_v2  ;;  %v944_v56 = vsel %vm420_vm3, 1.0, %v1227_v49 }
  0x8e   :  { %73 = vperm.xlu1 %1186, %v1367_v28   ;;  %v356_v57 = vadd.f32 %v928_v55, %v244_v52  ;;  %v661_v52 = vld [vmem:[%s1691_s2] sm:$0xff] }
  0x8f   :  { %v1462_v58 = vpop.permute.xlu0 %376 }
  0x90   :  { %v44_v59 = vpop.permute.xlu1 %43  ;;  %v468_v60 = vadd.f32 %v944_v56, %v356_v57  ;;  %vm421_vm13 = vcmp.eq.s32.totalorder %v1462_v58, %v1444_v46  ;;  %v1143_v56 = vpack.c.bf16 %v662_v53, %v661_v52 }
  0x91   :  { %vm86_vm6 = vcmp.eq.s32.totalorder %v44_v59, %v1444_v46  ;;  %v945_v34 = vsel %vm421_vm13, 1.0, %v1227_v49 }
  0x92   :  { %1187 = vset.pattern.permute.xlu1 %v1224_v3  ;;  %v484_v61 = vmul.f32 0.25, %v468_v60  ;;  %v898_v23 = vsel %vm86_vm6, 1.0, %v1227_v49  ;;  %1144 = vmatprep.subr.bf16.mxu1 %v1143_v56 }
  0x93   :  { %185 = vperm.xlu1 %1187, %v1367_v28   ;;  %v380_v62 = vpop.permute.xlu0 %379  ;;  %1146 = vmatpush3.bf16.msra.mxu1 %v1143_v56 }
  0x94   :  { %1059 = vmatprep.mubr.f32.mxu0 %v484_v61  ;;  %vm422_vm10 = vcmp.eq.s32.totalorder %v380_v62, %v1444_v46 }
  0x95   :  { %v156_v63 = vpop.permute.xlu1 %155  ;;  %v946_v29 = vsel %vm422_vm10, 1.0, %v1227_v49 }
  0x96   :  { %vm198_vm4 = vcmp.eq.s32.totalorder %v156_v63, %v1444_v46 }
  0x97   :  { %1188 = vset.pattern.permute.xlu1 %v1223_v2  ;;  %v1467_v0 = vpop.permute.xlu0 %382 }
  0x98   :  { %76 = vperm.xlu1 %1188, %v1380_v32   ;;  %vm423_vm2 = vcmp.eq.s32.totalorder %v1467_v0, %v1444_v46 }
  0x99   :  { %v947_v48 = vsel %vm423_vm2, 1.0, %v1227_v49 }
  0x9a   :  { %v1470_v1 = vpop.permute.xlu1 %46 }
  0x9b   :  { %v1472_v6 = vpop.permute.xlu0 %385  ;;  %vm87_vm15 = vcmp.eq.s32.totalorder %v1470_v1, %v1444_v46 }
  0x9c   :  { %1189 = vset.pattern.permute.xlu1 %v1224_v3  ;;  %vm424_vm0 = vcmp.eq.s32.totalorder %v1472_v6, %v1444_v46  ;;  %v899_v40 = vsel %vm87_vm15, 1.0, %v1227_v49 }
  0x9d   :  { %188 = vperm.xlu1 %1189, %v1380_v32   ;;  %v948_v41 = vsel %vm424_vm0, 1.0, %v1227_v49 }
  0x9f   :  { %v159_v7 = vpop.permute.xlu1 %158  ;;  %v1476_v8 = vpop.permute.xlu0 %388 }
  0xa0   :  { %vm199_vm14 = vcmp.eq.s32.totalorder %v159_v7, %v1444_v46  ;;  %vm425_vm6 = vcmp.eq.s32.totalorder %v1476_v8, %v1444_v46 }
  0xa1   :  { %1190 = vset.pattern.permute.xlu1 %v1225_v4  ;;  %v915_v35 = vsel %vm199_vm14, 1.0, %v1227_v49  ;;  %v949_v0 = vsel %vm425_vm6, 1.0, %v1227_v49 }
  0xa2   :  { %297 = vperm.xlu1 %1190, %v1367_v28   ;;  %v247_v45 = vadd.f32 %v915_v35, %v899_v40 }
  0xa3   :  { %v1480_v9 = vpop.permute.xlu0 %391 }
  0xa4   :  { %v268_v10 = vpop.permute.xlu1 %267  ;;  %vm426_vm14 = vcmp.eq.s32.totalorder %v1480_v9, %v1444_v46 }
  0xa5   :  { %vm310_vm7 = vcmp.eq.s32.totalorder %v268_v10, %v1444_v46 }
  0xa6   :  { %1191 = vset.pattern.permute.xlu1 %v1223_v2  ;;  %v930_v24 = vsel %vm310_vm7, 1.0, %v1227_v49 }
  0xa7   :  { %79 = vperm.xlu1 %1191, %v32_v11   ;;  %v1486_v12 = vpop.permute.xlu0 %394 }
  0xa8   :  { %vm427_vm13 = vcmp.eq.s32.totalorder %v1486_v12, %v1444_v46 }
  0xa9   :  { %v50_v13 = vpop.permute.xlu1 %49 }
  0xaa   :  { %vm88_vm11 = vcmp.eq.s32.totalorder %v50_v13, %v1444_v46 }
  0xab   :  { %1192 = vset.pattern.permute.xlu1 %v1224_v3  ;;  %v1489_v14 = vpop.permute.xlu0 %397  ;;  %v900_v32 = vsel %vm88_vm11, 1.0, %v1227_v49 }
  0xac   :  { %191 = vperm.xlu1 %1192, %v32_v11   ;;  %vm428_vm6 = vcmp.eq.s32.totalorder %v1489_v14, %v1444_v46 }
  0xae   :  { %v162_v15 = vpop.permute.xlu1 %161 }
  0xaf   :  { %v1491_v16 = vpop.permute.xlu0 %400  ;;  %vm200_vm9 = vcmp.eq.s32.totalorder %v162_v15, %v1444_v46 }
  0xb0   :  { %1193 = vset.pattern.permute.xlu1 %v1223_v2  ;;  %v916_v27 = vsel %vm200_vm9, 1.0, %v1227_v49 }
  0xb1   :  { %82 = vperm.xlu1 %1193, %v1424_v42   ;;  %v248_v36 = vadd.f32 %v916_v27, %v900_v32  ;;  %v950_v27 = vsel %vm426_vm14, 1.0, %v1227_v49 }
  0xb3   :  { %v1495_v17 = vpop.permute.xlu1 %52  ;;  %v1497_v18 = vpop.permute.xlu0 %403 }
  0xb4   :  { %vm430_vm14 = vcmp.eq.s32.totalorder %v1497_v18, %v1444_v46 }
  0xb5   :  { %1194 = vset.pattern.permute.xlu1 %v1224_v3  ;;  %v914_v3 = vsel %vm198_vm4, 1.0, %v1227_v49  ;;  %vm89_vm4 = vcmp.eq.s32.totalorder %v1495_v17, %v1444_v46 }
  0xb6   :  { %194 = vperm.xlu1 %1194, %v1424_v42   ;;  %v246_v25 = vadd.f32 %v914_v3, %v898_v23  ;;  %v901_v57 = vsel %vm89_vm4, 1.0, %v1227_v49 }
  0xb7   :  { %v1501_v19 = vpop.permute.xlu0 %406 }
  0xb8   :  { %v165_v20 = vpop.permute.xlu1 %164  ;;  %v358_v30 = vadd.f32 %v930_v24, %v246_v25 }
  0xb9   :  { %vm201_vm3 = vcmp.eq.s32.totalorder %v165_v20, %v1444_v46 }
  0xba   :  { %1196 = vset.pattern.permute.xlu1 %v1225_v4  ;;  %v913_v4 = vsel %vm197_vm5, 1.0, %v1227_v49  ;;  %v470_v44 = vadd.f32 %v946_v29, %v358_v30  ;;  %v917_v50 = vsel %vm201_vm3, 1.0, %v1227_v49 }
  0xbb   :  { %303 = vperm.xlu1 %1196, %v32_v11   ;;  %v1504_v21 = vpop.permute.xlu0 %409  ;;  %v245_v28 = vadd.f32 %v913_v4, %v897_v26  ;;  %v249_v62 = vadd.f32 %v917_v50, %v901_v57 }
  0xbc   :  { %v486_v60 = vmul.f32 0.25, %v470_v44 }
  0xbd   :  { %v274_v2 = vpop.permute.xlu1 %273 }
  0xbe   :  { %vm312_vm12 = vcmp.eq.s32.totalorder %v274_v2, %v1444_v46 }
  0xbf   :  { %1197 = vset.pattern.permute.xlu1 %v1226_v5  ;;  %v1513_v22 = vpop.permute.xlu0 %412  ;;  %v932_v33 = vsel %vm312_vm12, 1.0, %v1227_v49 }
  0xc0   :  { %415 = vperm.xlu1 %1197, %v32_v11  }
  0xc2   :  { %v1524_v5 = vpop.permute.xlu1 %55 }
  0xc3   :  { %vm90_vm11 = vcmp.eq.s32.totalorder %v1524_v5, %v1444_v46  ;;  %v951_v5 = vsel %vm427_vm13, 1.0, %v1227_v49  ;;  %vm431_vm13 = vcmp.eq.s32.totalorder %v1501_v19, %v1444_v46 }
  0xc4   :  { %418 = vperm.xlu1 %1197, %v1424_v42   ;;  %v265_v31 = vpop.permute.xlu0 %264  ;;  %v360_v42 = vadd.f32 %v932_v33, %v248_v36  ;;  %v902_v23 = vsel %vm90_vm11, 1.0, %v1227_v49 }
  0xc5   :  { %vm309_vm1 = vcmp.eq.s32.totalorder %v265_v31, %v1444_v46 }
  0xc6   :  { %v929_v37 = vsel %vm309_vm1, 1.0, %v1227_v49  ;;  %v472_v61 = vadd.f32 %v948_v41, %v360_v42 }
  0xc7   :  { %v357_v38 = vadd.f32 %v929_v37, %v245_v28  ;;  %v168_v39 = vpop.permute.xlu1 %167 }
  0xc8   :  { %v271_v43 = vpop.permute.xlu0 %270  ;;  %v488_v8 = vmul.f32 0.25, %v472_v61  ;;  %vm202_vm9 = vcmp.eq.s32.totalorder %v168_v39, %v1444_v46 }
  0xc9   :  { %vm311_vm5 = vcmp.eq.s32.totalorder %v271_v43, %v1444_v46  ;;  %v469_v47 = vadd.f32 %v945_v34, %v357_v38  ;;  %v918_v3 = vsel %vm202_vm9, 1.0, %v1227_v49 }
  0xca   :  { %v931_v51 = vsel %vm311_vm5, 1.0, %v1227_v49  ;;  %v250_v26 = vadd.f32 %v918_v3, %v902_v23  ;;  %vm429_vm5 = vcmp.eq.s32.totalorder %v1491_v16, %v1444_v46 }
  0xcb   :  { %v359_v54 = vadd.f32 %v931_v51, %v247_v45  ;;  %v485_v55 = vmul.f32 0.25, %v469_v47  ;;  %v952_v51 = vsel %vm428_vm6, 1.0, %v1227_v49  ;;  %vm432_vm6 = vcmp.eq.s32.totalorder %v1504_v21, %v1444_v46 }
  0xcc   :  { %v59_v58 = vpop.permute.xlu1 %58  ;;  %v277_v59 = vpop.permute.xlu0 %276 }
  0xcd   :  { %vm313_vm7 = vcmp.eq.s32.totalorder %v277_v59, %v1444_v46  ;;  %1060 = vmatmul.mubr.f32.vlgmr.msra.gmra.mrb[0].mxu0 %v485_v55  ;;  %v471_v63 = vadd.f32 %v947_v48, %v359_v54  ;;  %vm91_vm8 = vcmp.eq.s32.totalorder %v59_v58, %v1444_v46  ;;  %v953_v48 = vsel %vm429_vm5, 1.0, %v1227_v49 }
  0xce   :  { %v933_v1 = vsel %vm313_vm7, 1.0, %v1227_v49  ;;  %1062 = vmatprep.mubr.f32.mxu0 %v486_v60  ;;  %v903_v15 = vsel %vm91_vm8, 1.0, %v1227_v49  ;;  %vm433_vm5 = vcmp.eq.s32.totalorder %v1513_v22, %v1444_v46 }
  0xcf   :  { %v361_v6 = vadd.f32 %v933_v1, %v249_v62  ;;  %v487_v7 = vmul.f32 0.25, %v471_v63 }
  0xd0   :  { %v283_v10 = vpop.permute.xlu0 %282 }
  0xd1   :  { %v171_v11 = vpop.permute.xlu1 %170  ;;  %1063 = vmatmul.mubr.f32.gmra.mrb[2].mxu0 %v487_v7  ;;  %vm315_vm10 = vcmp.eq.s32.totalorder %v283_v10, %v1444_v46  ;;  %v473_v13 = vadd.f32 %v949_v0, %v361_v6  ;;  %v955_v10 = vsel %vm431_vm13, 1.0, %v1227_v49 }
  0xd2   :  { %vm203_vm12 = vcmp.eq.s32.totalorder %v171_v11, %v1444_v46  ;;  %1065 = vmatprep.mubr.f32.mxu0 %v488_v8  ;;  %v935_v20 = vsel %vm315_vm10, 1.0, %v1227_v49 }
  0xd3   :  { %v919_v17 = vsel %vm203_vm12, 1.0, %v1227_v49  ;;  %v489_v2 = vmul.f32 0.25, %v473_v13  ;;  %v954_v13 = vsel %vm430_vm14, 1.0, %v1227_v49 }
  0xd4   :  { %v251_v4 = vadd.f32 %v919_v17, %v903_v15  ;;  %v289_v35 = vpop.permute.xlu0 %288 }
  0xd5   :  { %1066 = vmatmul.mubr.f32.gmra.mrb[4].mxu0 %v489_v2  ;;  %vm317_vm1 = vcmp.eq.s32.totalorder %v289_v35, %v1444_v46 }
  0xd6   :  { %v363_v24 = vadd.f32 %v935_v20, %v251_v4  ;;  %v280_v25 = vpop.permute.xlu1 %279  ;;  %v937_v39 = vsel %vm317_vm1, 1.0, %v1227_v49 }
  0xd7   :  { %vm314_vm15 = vcmp.eq.s32.totalorder %v280_v25, %v1444_v46 }
  0xd8   :  { %v934_v12 = vsel %vm314_vm15, 1.0, %v1227_v49  ;;  %v475_v29 = vadd.f32 %v951_v5, %v363_v24  ;;  %v295_v14 = vpop.permute.xlu0 %294 }
  0xd9   :  { %v362_v28 = vadd.f32 %v934_v12, %v250_v26  ;;  %vm319_vm9 = vcmp.eq.s32.totalorder %v295_v14, %v1444_v46 }
  0xda   :  { %v491_v9 = vmul.f32 0.25, %v475_v29  ;;  %v939_v61 = vsel %vm319_vm9, 1.0, %v1227_v49 }
  0xdb   :  { %v62_v30 = vpop.permute.xlu1 %61  ;;  %v474_v31 = vadd.f32 %v950_v27, %v362_v28 }
  0xdc   :  { %vm92_vm4 = vcmp.eq.s32.totalorder %v62_v30, %v1444_v46  ;;  %v301_v18 = vpop.permute.xlu0 %300 }
  0xdd   :  { %v490_v32 = vmul.f32 0.25, %v474_v31  ;;  %v904_v42 = vsel %vm92_vm4, 1.0, %v1227_v49  ;;  %vm321_vm1 = vcmp.eq.s32.totalorder %v301_v18, %v1444_v46 }
  0xde   :  { %v941_v5 = vsel %vm321_vm1, 1.0, %v1227_v49 }
  0xdf   :  { %1068 = vmatprep.mubr.f32.mxu0 %v490_v32  ;;  %v957_v32 = vsel %vm433_vm5, 1.0, %v1227_v49 }
  0xe0   :  { %v174_v33 = vpop.permute.xlu1 %173  ;;  %1069 = vmatmul.mubr.f32.gmra.mrb[6].mxu0 %v491_v9 }
  0xe1   :  { %vm204_vm2 = vcmp.eq.s32.totalorder %v174_v33, %v1444_v46  ;;  %v956_v33 = vsel %vm432_vm6, 1.0, %v1227_v49 }
  0xe2   :  { %v920_v40 = vsel %vm204_vm2, 1.0, %v1227_v49 }
  0xe3   :  { %v252_v45 = vadd.f32 %v920_v40, %v904_v42  ;;  %v307_v42 = vpop.permute.xlu0 %306 }
  0xe4   :  { %vm323_vm13 = vcmp.eq.s32.totalorder %v307_v42, %v1444_v46 }
  0xe5   :  { %v65_v34 = vpop.permute.xlu1 %64 }
  0xe6   :  { %vm93_vm0 = vcmp.eq.s32.totalorder %v65_v34, %v1444_v46 }
  0xe7   :  { %v905_v37 = vsel %vm93_vm0, 1.0, %v1227_v49 }
  0xea   :  { %v177_v36 = vpop.permute.xlu1 %176 }
  0xeb   :  { %vm205_vm3 = vcmp.eq.s32.totalorder %v177_v36, %v1444_v46 }
  0xec   :  { %v921_v38 = vsel %vm205_vm3, 1.0, %v1227_v49 }
  0xed   :  { %v253_v41 = vadd.f32 %v921_v38, %v905_v37 }
  0xef   :  { %v365_v43 = vadd.f32 %v937_v39, %v253_v41  ;;  %v286_v44 = vpop.permute.xlu1 %285 }
  0xf0   :  { %vm316_vm7 = vcmp.eq.s32.totalorder %v286_v44, %v1444_v46 }
  0xf1   :  { %v936_v47 = vsel %vm316_vm7, 1.0, %v1227_v49  ;;  %v477_v52 = vadd.f32 %v953_v48, %v365_v43 }
  0xf2   :  { %v364_v50 = vadd.f32 %v936_v47, %v252_v45 }
  0xf3   :  { %v493_v55 = vmul.f32 0.25, %v477_v52 }
  0xf4   :  { %v68_v53 = vpop.permute.xlu1 %67  ;;  %v476_v16 = vadd.f32 %v952_v51, %v364_v50 }
  0xf5   :  { %vm94_vm12 = vcmp.eq.s32.totalorder %v68_v53, %v1444_v46 }
  0xf6   :  { %v492_v54 = vmul.f32 0.25, %v476_v16  ;;  %v906_v0 = vsel %vm94_vm12, 1.0, %v1227_v49 }
  0xf8   :  { %1071 = vmatprep.mubr.f32.mxu0 %v492_v54  ;;  %v943_v54 = vsel %vm323_vm13, 1.0, %v1227_v49 }
  0xf9   :  { %v180_v56 = vpop.permute.xlu1 %179  ;;  %1072 = vmatmul.mubr.f32.gmra.mrb[8].mxu0 %v493_v55 }
  0xfa   :  { %vm206_vm10 = vcmp.eq.s32.totalorder %v180_v56, %v1444_v46 }
  0xfb   :  { %v922_v62 = vsel %vm206_vm10, 1.0, %v1227_v49 }
  0xfc   :  { %v254_v7 = vadd.f32 %v922_v62, %v906_v0 }
  0xfe   :  { %v71_v57 = vpop.permute.xlu1 %70 }
  0xff   :  { %vm95_vm8 = vcmp.eq.s32.totalorder %v71_v57, %v1444_v46 }
 0x100   :  { %v907_v59 = vsel %vm95_vm8, 1.0, %v1227_v49 }
 0x103   :  { %v183_v58 = vpop.permute.xlu1 %182 }
 0x104   :  { %vm207_vm11 = vcmp.eq.s32.totalorder %v183_v58, %v1444_v46 }
 0x105   :  { %v923_v60 = vsel %vm207_vm11, 1.0, %v1227_v49 }
 0x106   :  { %v255_v63 = vadd.f32 %v923_v60, %v907_v59 }
 0x108   :  { %v367_v1 = vadd.f32 %v939_v61, %v255_v63  ;;  %v292_v6 = vpop.permute.xlu1 %291 }
 0x109   :  { %vm318_vm15 = vcmp.eq.s32.totalorder %v292_v6, %v1444_v46 }
 0x10a   :  { %v938_v8 = vsel %vm318_vm15, 1.0, %v1227_v49  ;;  %v479_v15 = vadd.f32 %v955_v10, %v367_v1 }
 0x10b   :  { %v366_v11 = vadd.f32 %v938_v8, %v254_v7 }
 0x10c   :  { %v495_v2 = vmul.f32 0.25, %v479_v15 }
 0x10d   :  { %v74_v17 = vpop.permute.xlu1 %73  ;;  %v478_v19 = vadd.f32 %v954_v13, %v366_v11 }
 0x10e   :  { %vm96_vm4 = vcmp.eq.s32.totalorder %v74_v17, %v1444_v46 }
 0x10f   :  { %v494_v20 = vmul.f32 0.25, %v478_v19  ;;  %v908_v12 = vsel %vm96_vm4, 1.0, %v1227_v49  ;;  %v960_v19 = vld [vmem:[%s1692_s3] ss:$0 sm:$0xff]  ;;  %s1228_s3 = smov [#allocation2]  }
 0x110   :  { %s885_s30 = sshll.u32 %s1228_s3, 4  ;;  %s886_s30 = int_to_ptr.vmem [resolvable:$true] %s885_s30 }
 0x111   :  { %1074 = vmatprep.mubr.f32.mxu0 %v494_v20  ;;  %s1199_s5 = scalar_lea.vmem %s886_s30, 2048  ;;  %p1204_p1 = scmp.lt.s32.totalorder %s886_s30, %s886_s30 }
 0x112   :  { %v186_v3 = vpop.permute.xlu1 %185  ;;  %1075 = vmatmul.mubr.f32.gmra.mrb[10].mxu0 %v495_v2  ;;  %p1200_p0 = scmp.ne.s32.totalorder %s886_s30, %s1199_s5  ;;  %p1205_p2 = scmp.lt.s32.totalorder %s1199_s5, %s1199_s5 }
 0x113   :  { %vm208_vm2 = vcmp.eq.s32.totalorder %v186_v3, %v1444_v46 }
 0x114   :  { %v924_v26 = vsel %vm208_vm2, 1.0, %v1227_v49  ;;  %p1206_p3 = por %p1205_p2, %p1204_p1 }
 0x115   :  { %v256_v30 = vadd.f32 %v924_v26, %v908_v12 }
 0x116   :  { %p1207_p4 = pnand %p1206_p3, %p1200_p0 }
 0x117   :  { %v77_v4 = vpop.permute.xlu1 %76 }
 0x118   :  { %vm97_vm0 = vcmp.eq.s32.totalorder %v77_v4, %v1444_v46 }
 0x119   :  { %v909_v24 = vsel %vm97_vm0, 1.0, %v1227_v49  ;;  %vm670_vm0 = vcmask 130048  }
 0x11c   :  { %v189_v23 = vpop.permute.xlu1 %188 }
 0x11d   :  { %vm209_vm3 = vcmp.eq.s32.totalorder %v189_v23, %v1444_v46 }
 0x11e   :  { %v925_v25 = vsel %vm209_vm3, 1.0, %v1227_v49 }
 0x11f   :  { %v257_v27 = vadd.f32 %v925_v25, %v909_v24 }
 0x121   :  { %v369_v28 = vadd.f32 %v941_v5, %v257_v27  ;;  %v298_v29 = vpop.permute.xlu1 %297 }
 0x122   :  { %vm320_vm7 = vcmp.eq.s32.totalorder %v298_v29, %v1444_v46 }
 0x123   :  { %v940_v31 = vsel %vm320_vm7, 1.0, %v1227_v49  ;;  %v481_v34 = vadd.f32 %v957_v32, %v369_v28 }
 0x124   :  { %v368_v9 = vadd.f32 %v940_v31, %v256_v30 }
 0x125   :  { %v497_v37 = vmul.f32 0.25, %v481_v34 }
 0x126   :  { %v80_v35 = vpop.permute.xlu1 %79  ;;  %v480_v22 = vadd.f32 %v956_v33, %v368_v9 }
 0x127   :  { %vm98_vm9 = vcmp.eq.s32.totalorder %v80_v35, %v1444_v46 }
 0x128   :  { %v496_v36 = vmul.f32 0.25, %v480_v22  ;;  %v910_v43 = vsel %vm98_vm9, 1.0, %v1227_v49 }
 0x12a   :  { %1077 = vmatprep.mubr.f32.mxu0 %v496_v36 }
 0x12b   :  { %v192_v38 = vpop.permute.xlu1 %191  ;;  %1078 = vmatmul.mubr.f32.gmra.mrb[12].mxu0 %v497_v37 }
 0x12c   :  { %vm210_vm8 = vcmp.eq.s32.totalorder %v192_v38, %v1444_v46 }
 0x12d   :  { %v926_v41 = vsel %vm210_vm8, 1.0, %v1227_v49 }
 0x12e   :  { %v258_v47 = vadd.f32 %v926_v41, %v910_v43 }
 0x130   :  { %v83_v39 = vpop.permute.xlu1 %82 }
 0x131   :  { %vm99_vm12 = vcmp.eq.s32.totalorder %v83_v39, %v1444_v46 }
 0x132   :  { %v911_v48 = vsel %vm99_vm12, 1.0, %v1227_v49 }
 0x135   :  { %v195_v21 = vpop.permute.xlu1 %194 }
 0x136   :  { %vm211_vm10 = vcmp.eq.s32.totalorder %v195_v21, %v1444_v46 }
 0x137   :  { %v927_v44 = vsel %vm211_vm10, 1.0, %v1227_v49 }
 0x138   :  { %v259_v51 = vadd.f32 %v927_v44, %v911_v48 }
 0x13a   :  { %v304_v40 = vpop.permute.xlu1 %303  ;;  %v371_v57 = vadd.f32 %v943_v54, %v259_v51 }
 0x13b   :  { %vm322_vm11 = vcmp.eq.s32.totalorder %v304_v40, %v1444_v46 }
 0x13c   :  { %v942_v45 = vsel %vm322_vm11, 1.0, %v1227_v49 }
 0x13d   :  { %v370_v52 = vadd.f32 %v942_v45, %v258_v47 }
 0x13f   :  { %v416_v50 = vpop.permute.xlu1 %415 }
 0x140   :  { %vm434_vm14 = vcmp.eq.s32.totalorder %v416_v50, %v1444_v46 }
 0x141   :  { %v958_v53 = vsel %vm434_vm14, 1.0, %v1227_v49 }
 0x142   :  { %v482_v16 = vadd.f32 %v958_v53, %v370_v52 }
 0x143   :  { %v419_v55 = vpop.permute.xlu1 %418 }
 0x144   :  { %v498_v56 = vmul.f32 0.25, %v482_v16  ;;  %vm435_vm15 = vcmp.eq.s32.totalorder %v419_v55, %v1444_v46 }
 0x145   :  { %v959_v14 = vsel %vm435_vm15, 1.0, %v1227_v49 }
 0x146   :  { %v483_v58 = vadd.f32 %v959_v14, %v371_v57  ;;  %1080 = vmatprep.mubr.f32.mxu0 %v498_v56 }
 0x148   :  { %v499_v59 = vmul.f32 0.25, %v483_v58 }
 0x14a   :  { %1081 = vmatmul.mubr.f32.gmra.mrb[14].mxu0 %v499_v59 }
 0x1a0   :  { %v1061_v60 = vpop.f32.mrb[0].mxu0 }
 0x1a1   :  { %v582_v61 = vpop.f32.mrb[1].mxu0 }
 0x1a2   :  { %1087 = vmatprep.mubr.msk.f32.mxu1 %vm670_vm0, %v582_v61 }
 0x1a3   :  { %1088 = vmatmul.mubr.msk.f32.vlgmr.msra.gmra.mrb[0].mxu1 %vm670_vm0, %v1061_v60 }
 0x1a4   :  { %v1064_v62 = vpop.f32.mrb[2].mxu0 }
 0x1a5   :  { %v592_v63 = vpop.f32.mrb[3].mxu0 }
 0x1a6   :  { %1090 = vmatprep.mubr.msk.f32.mxu1 %vm670_vm0, %v592_v63 }
 0x1a7   :  { %1091 = vmatmul.mubr.msk.f32.gmra.mrb[2].mxu1 %vm670_vm0, %v1064_v62 }
 0x1a8   :  { %v1067_v46 = vpop.f32.mrb[4].mxu0 }
 0x1a9   :  { %v602_v0 = vpop.f32.mrb[5].mxu0 }
 0x1aa   :  { %1093 = vmatprep.mubr.msk.f32.mxu1 %vm670_vm0, %v602_v0 }
 0x1ab   :  { %1094 = vmatmul.mubr.msk.f32.gmra.mrb[4].mxu1 %vm670_vm0, %v1067_v46 }
 0x1b3   :  { %v1070_v49 = vpop.f32.mrb[6].mxu0 }
 0x1b4   :  { %v612_v1 = vpop.f32.mrb[7].mxu0 }
 0x1b5   :  { %1096 = vmatprep.mubr.msk.f32.mxu1 %vm670_vm0, %v612_v1 }
 0x1b6   :  { %1097 = vmatmul.mubr.msk.f32.gmra.mrb[6].mxu1 %vm670_vm0, %v1070_v49 }
 0x1cc   :  { %v1073_v6 = vpop.f32.mrb[8].mxu0 }
 0x1cd   :  { %v622_v7 = vpop.f32.mrb[9].mxu0 }
 0x1ce   :  { %1099 = vmatprep.mubr.msk.f32.mxu1 %vm670_vm0, %v622_v7 }
 0x1cf   :  { %1100 = vmatmul.mubr.msk.f32.gmra.mrb[8].mxu1 %vm670_vm0, %v1073_v6 }
 0x1e5   :  { %v1076_v8 = vpop.f32.mrb[10].mxu0 }
 0x1e6   :  { %v632_v10 = vpop.f32.mrb[11].mxu0 }
 0x1e7   :  { %1102 = vmatprep.mubr.msk.f32.mxu1 %vm670_vm0, %v632_v10 }
 0x1e8   :  { %1103 = vmatmul.mubr.msk.f32.gmra.mrb[10].mxu1 %vm670_vm0, %v1076_v8 }
 0x1fe   :  { %v1079_v11 = vpop.f32.mrb[12].mxu0 }
 0x1ff   :  { %v642_v13 = vpop.f32.mrb[13].mxu0 }
 0x200   :  { %1105 = vmatprep.mubr.msk.f32.mxu1 %vm670_vm0, %v642_v13 }
 0x201   :  { %1106 = vmatmul.mubr.msk.f32.gmra.mrb[12].mxu1 %vm670_vm0, %v1079_v11 }
 0x21d   :  { %v1082_v15 = vpop.f32.mrb[14].mxu0 }
 0x21e   :  { %v652_v17 = vpop.f32.mrb[15].mxu0 }
 0x21f   :  { %1108 = vmatprep.mubr.msk.f32.mxu1 %vm670_vm0, %v652_v17 }
 0x220   :  { %1109 = vmatmul.mubr.msk.f32.gmra.mrb[14].mxu1 %vm670_vm0, %v1082_v15 }
 0x276   :  { %v1089_v20 = vpop.f32.mrb[0].mxu1 }
 0x277   :  { %v791_v2 = vadd.f32 %v1089_v20, %v960_v19  ;;  %v785_v3 = vpop.f32.mrb[1].mxu1 }
 0x278   :  { %v786_v4 = vadd.f32 %v960_v19, %v785_v3 }
 0x279   :  { %865 = vst [vmem:[#allocation2 + $0x8] sm:$0xff] %v791_v2 }
 0x27a   :  { %864 = vst [vmem:[#allocation2] sm:$0xff] %v786_v4  ;;  %v1092_v18 = vpop.f32.mrb[2].mxu1 }
 0x27b   :  { %v801_v23 = vadd.f32 %v1092_v18, %v960_v19  ;;  %v795_v24 = vpop.f32.mrb[3].mxu1 }
 0x27c   :  { %v796_v25 = vadd.f32 %v960_v19, %v795_v24 }
 0x27d   :  { %867 = vst [vmem:[#allocation2 + $0x18] sm:$0xff] %v801_v23 }
 0x27e   :  { %866 = vst [vmem:[#allocation2 + $0x10] sm:$0xff] %v796_v25  ;;  %v1095_v5 = vpop.f32.mrb[4].mxu1 }
 0x27f   :  { %v811_v26 = vadd.f32 %v1095_v5, %v960_v19  ;;  %v805_v27 = vpop.f32.mrb[5].mxu1 }
 0x280   :  { %v806_v12 = vadd.f32 %v960_v19, %v805_v27 }
 0x281   :  { %869 = vst [vmem:[#allocation2 + $0x28] sm:$0xff] %v811_v26 }
 0x282   :  { %868 = vst [vmem:[#allocation2 + $0x20] sm:$0xff] %v806_v12 }
 0x289   :  { %v1098_v28 = vpop.f32.mrb[6].mxu1 }
 0x28a   :  { %v821_v29 = vadd.f32 %v1098_v28, %v960_v19  ;;  %v815_v30 = vpop.f32.mrb[7].mxu1 }
 0x28b   :  { %v816_v31 = vadd.f32 %v960_v19, %v815_v30 }
 0x28c   :  { %871 = vst [vmem:[#allocation2 + $0x38] sm:$0xff] %v821_v29 }
 0x28d   :  { %870 = vst [vmem:[#allocation2 + $0x30] sm:$0xff] %v816_v31 }
 0x2a2   :  { %v1101_v32 = vpop.f32.mrb[8].mxu1 }
 0x2a3   :  { %v831_v9 = vadd.f32 %v1101_v32, %v960_v19  ;;  %v825_v33 = vpop.f32.mrb[9].mxu1 }
 0x2a4   :  { %v826_v34 = vadd.f32 %v960_v19, %v825_v33 }
 0x2a5   :  { %873 = vst [vmem:[#allocation2 + $0x48] sm:$0xff] %v831_v9 }
 0x2a6   :  { %872 = vst [vmem:[#allocation2 + $0x40] sm:$0xff] %v826_v34 }
 0x2bb   :  { %v1104_v35 = vpop.f32.mrb[10].mxu1 }
 0x2bc   :  { %v841_v22 = vadd.f32 %v1104_v35, %v960_v19  ;;  %v835_v36 = vpop.f32.mrb[11].mxu1 }
 0x2bd   :  { %v836_v37 = vadd.f32 %v960_v19, %v835_v36 }
 0x2be   :  { %875 = vst [vmem:[#allocation2 + $0x58] sm:$0xff] %v841_v22 }
 0x2bf   :  { %874 = vst [vmem:[#allocation2 + $0x50] sm:$0xff] %v836_v37 }
 0x2d4   :  { %v1107_v38 = vpop.f32.mrb[12].mxu1 }
 0x2d5   :  { %v851_v39 = vadd.f32 %v1107_v38, %v960_v19  ;;  %v845_v21 = vpop.f32.mrb[13].mxu1 }
 0x2d6   :  { %v846_v40 = vadd.f32 %v960_v19, %v845_v21 }
 0x2d7   :  { %877 = vst [vmem:[#allocation2 + $0x68] sm:$0xff] %v851_v39 }
 0x2d8   :  { %876 = vst [vmem:[#allocation2 + $0x60] sm:$0xff] %v846_v40 }
 0x2f3   :  { %v1110_v41 = vpop.f32.mrb[14].mxu1 }
 0x2f4   :  { %v861_v42 = vadd.f32 %v1110_v41, %v960_v19  ;;  %v855_v43 = vpop.f32.mrb[15].mxu1 }
 0x2f5   :  { %v856_v44 = vadd.f32 %v960_v19, %v855_v43 }
 0x2f6   :  { %879 = vst [vmem:[#allocation2 + $0x78] sm:$0xff] %v861_v42 }
 0x2f7   :  { %878 = vst [vmem:[#allocation2 + $0x70] sm:$0xff] %v856_v44 }
 0x2f8   :  { %1210 = shalt.err (!%p1207_p4)
}
 0x2f9   :  { %s1211_s8 = scalar_lea.hbm %s1693_s4, 2048 }
 0x2fa   :  { %p1212_p5 = scmp.ne.s32.totalorder %s1693_s4, %s1211_s8  ;;  %p1215_p6 = scmp.lt.u32.totalorder %s1211_s8, %s1693_s4 }
 0x2fc   :  { %p1217_p7 = pnand %p1215_p6, %p1212_p5 }
 0x2fe   :  { %1220 = shalt.err (!%p1217_p7)
}
 0x2ff   :  { %s1229_s13 = smov 128   ;;  %s1230_s14 = smov 8  }
 0x300   :  { %891 = dma.vmem_to_hbm [thread:$0]  %s886_s30, 2048, %s1693_s4, [#allocation3], %s1229_s13, %s1229_s13, %s1230_s14  }
 0x301   :  { %1221 = dma.done.wait [#allocation3], 2048  }
 0x302   :  { %1222 = vsyncadd [#allocation3], 4294965248 }
 0x303   :  { %895 = vsyncpa [#allocation3], 1 }

</bundles_post_ra>
